<compile_context>
chip_gen: v6e
topology: v6e:2x2x1
jax: 0.10.0
libtpu: 0.0.40
codegen_flags: <defaults>
</compile_context>

<pallas_src>
import functools

import jax
import jax.numpy as jnp
from jax.experimental import pallas as pl
from jax.experimental.pallas import tpu as pltpu

LANE = 128  # vreg lane width: pad feature dims to this for lane-dense stores.


def _round_up(x, m):
    return (x + m - 1) // m * m


# ---------------------------------------------------------------------------
# Kernel 1: row-tiled dense linear  h = z @ w + b   (computed once per layer)
# ---------------------------------------------------------------------------
def linear_kernel(z_ref, w_ref, b_ref, o_ref):
    h = jnp.dot(z_ref[...], w_ref[...], preferred_element_type=jnp.float32)
    h = h + b_ref[...]                       # (tm, Fout) + (1, Fout)
    o_ref[...] = h.astype(o_ref.dtype)


def linear(z, w, b, *, tm=128):
    N, fin = z.shape
    fout = w.shape[1]
    assert N % tm == 0
    cost = pl.CostEstimate(
        flops=2 * N * fin * fout,
        transcendentals=0,
        bytes_accessed=(N * fin + fin * fout + fout + N * fout) * 2,
    )
    return pl.pallas_call(
        linear_kernel,
        out_shape=jax.ShapeDtypeStruct((N, fout), jnp.bfloat16),
        grid=(N // tm,),
        in_specs=[
            pl.BlockSpec((tm, fin), lambda i: (i, 0)),     # row tile of z
            pl.BlockSpec((fin, fout), lambda i: (0, 0)),   # full (padded) W
            pl.BlockSpec((1, fout), lambda i: (0, 0)),     # bias
        ],
        out_specs=pl.BlockSpec((tm, fout), lambda i: (i, 0)),
        compiler_params=pltpu.CompilerParams(
            dimension_semantics=("parallel",)),
        cost_estimate=cost,
    )(z, w, b)


# ---------------------------------------------------------------------------
# Kernel 2: fused aggregation  out = [next_linear]( [relu]( a[rows,:] @ h ) )
#   K-tiled reduction over the neighbor axis with an f32 VMEM accumulator;
#   the optional ReLU + next layer's linear run once per row-tile at the last
#   reduction step (so the next layer's z @ W + b is never recomputed).
# ---------------------------------------------------------------------------
def spmm_fused_kernel(*refs, apply_act, has_linear):
    if has_linear:
        a_ref, h_ref, w_ref, b_ref, o_ref, acc_ref = refs
    else:
        a_ref, h_ref, o_ref, acc_ref = refs
    k = pl.program_id(1)

    @pl.when(k == 0)
    def _():
        acc_ref[...] = jnp.zeros_like(acc_ref)

    acc_ref[...] += jnp.dot(a_ref[...], h_ref[...],
                            preferred_element_type=jnp.float32)

    @pl.when(k == pl.num_programs(1) - 1)
    def _():
        z = acc_ref[...]
        if apply_act:
            z = jnp.maximum(z, 0.0)          # F.relu
        if has_linear:
            z = jnp.dot(z.astype(w_ref.dtype), w_ref[...],
                        preferred_element_type=jnp.float32) + b_ref[...]
        o_ref[...] = z.astype(o_ref.dtype)


def spmm_fused(a, h, w=None, b=None, *, apply_act, tm=128, tk=128,
               out_dtype=jnp.bfloat16):
    N = a.shape[0]
    fh = h.shape[1]
    has_linear = w is not None
    fout = w.shape[1] if has_linear else fh
    assert N % tm == 0 and N % tk == 0

    kernel = functools.partial(spmm_fused_kernel, apply_act=apply_act,
                               has_linear=has_linear)
    in_specs = [
        pl.BlockSpec((tm, tk), lambda i, k: (i, k)),   # a row/col tile
        pl.BlockSpec((tk, fh), lambda i, k: (k, 0)),   # matching h slab
    ]
    args = [a, h]
    if has_linear:
        in_specs += [
            pl.BlockSpec((fh, fout), lambda i, k: (0, 0)),   # next-layer W
            pl.BlockSpec((1, fout), lambda i, k: (0, 0)),    # next-layer b
        ]
        args += [w, b]

    flops = 2 * N * N * fh + (2 * N * fh * fout if has_linear else 0)
    bytes_accessed = (N * N + N * fh) * 2 + N * fout * jnp.dtype(out_dtype).itemsize
    if has_linear:
        bytes_accessed += (fh * fout + fout) * 2

    return pl.pallas_call(
        kernel,
        out_shape=jax.ShapeDtypeStruct((N, fout), out_dtype),
        grid=(N // tm, N // tk),
        in_specs=in_specs,
        out_specs=pl.BlockSpec((tm, fout), lambda i, k: (i, 0)),
        scratch_shapes=[pltpu.VMEM((tm, fh), jnp.float32)],
        compiler_params=pltpu.CompilerParams(
            dimension_semantics=("parallel", "arbitrary")),
        cost_estimate=pl.CostEstimate(flops=flops, transcendentals=0,
                                      bytes_accessed=bytes_accessed),
    )(*args)


# ---------------------------------------------------------------------------
# Network forward
# ---------------------------------------------------------------------------
def network_forward(a, x, params, *, tm=128, tk=128):
    """params: list of (w, b); w shape (Fin, Fout) (= PyTorch weight.T), b (1, Fout)."""
    L = len(params)
    a_bf = a.astype(jnp.bfloat16)

    # Zero-pad feature dims to the 128-lane width once (lane-dense stores,
    # full MXU N-dim). Padding is zeros so padded columns stay exactly zero.
    padded = []
    for idx, (w, b) in enumerate(params):
        fin, fout = w.shape
        fin_p = fin if idx == 0 else _round_up(fin, LANE)
        fout_p = _round_up(fout, LANE)
        wp = jnp.zeros((fin_p, fout_p), jnp.bfloat16).at[:fin, :fout].set(
            w.astype(jnp.bfloat16))
        bp = jnp.zeros((1, fout_p), jnp.bfloat16).at[:, :fout].set(
            b.astype(jnp.bfloat16))
        padded.append((wp, bp))

    # Stage 1: first linear, computed exactly once.
    h = linear(x.astype(jnp.bfloat16), padded[0][0], padded[0][1], tm=tm)

    # Stages 2..L: h <- relu(a @ h) @ W_l + b_l   (spmm + act + next linear fused)
    for l in range(1, L):
        h = spmm_fused(a_bf, h, padded[l][0], padded[l][1],
                       apply_act=True, tm=tm, tk=tk)

    # Final aggregation (no activation, no further linear), f32 lane-dense output.
    out = spmm_fused(a_bf, h, apply_act=False, tm=tm, tk=tk,
                     out_dtype=jnp.float32)
    return out[:, : params[-1][0].shape[1]]


# ---------------------------------------------------------------------------
# Reference / init / test
# ---------------------------------------------------------------------------
def network_ref(a, x, params):
    z = x
    for w, b in params[:-1]:
        z = jnp.maximum(a @ (z @ w + b), 0.0)
    w, b = params[-1]
    return a @ (z @ w + b)


def init_params(key, n_feats):
    """Deterministic Linear-like init: U(-1/sqrt(fan_in), 1/sqrt(fan_in))."""
    params = []
    for fin, fout in zip(n_feats[:-1], n_feats[1:]):
        key, kw, kb = jax.random.split(key, 3)
        bound = 1.0 / jnp.sqrt(jnp.float32(fin))
        w = jax.random.uniform(kw, (fin, fout), jnp.float32, -bound, bound)
        b = jax.random.uniform(kb, (1, fout), jnp.float32, -bound, bound)
        params.append((w, b))
    return params


if __name__ == "__main__":
    key = jax.random.PRNGKey(0)
    n_feats = [32, 64, 16]   # Network(n_feats=[32, 64, 16], activation="relu")
    N = 256                  # number of graph nodes (gives a multi-step grid)

    k_a, k_x, k_p = jax.random.split(key, 3)
    # Dense row-normalized adjacency standing in for the sparse `a`.
    a = jax.random.uniform(k_a, (N, N), jnp.float32)
    a = a / jnp.sum(a, axis=1, keepdims=True)
    x = jax.random.normal(k_x, (N, n_feats[0]), jnp.float32)
    params = init_params(k_p, n_feats)

    out = jax.block_until_ready(network_forward(a, x, params))
    ref = network_ref(a, x, params)

    assert out.shape == (N, n_feats[-1])
    # bf16 MXU inputs -> compare against the f32 reference with a looser tol.
    assert jnp.allclose(out, ref, atol=3e-2, rtol=3e-2), \
        float(jnp.max(jnp.abs(out - ref)))

    print("KERNEL_OK")
</pallas_src>

<mosaic_0001>
module attributes {stable_mosaic.version = 11 : i64} {
  func.func @linear_kernel(%arg0: i32, %arg1: memref<128x32xbf16, #tpu.memory_space<vmem>>, %arg2: memref<32x128xbf16, #tpu.memory_space<vmem>>, %arg3: memref<1x128xbf16, #tpu.memory_space<vmem>>, %arg4: memref<128x128xbf16, #tpu.memory_space<vmem>>) attributes {dimension_semantics = [#tpu.dimension_semantics<parallel>], iteration_bounds = array<i64: 2>, scalar_prefetch = 0 : i64, scratch_operands = 0 : i64, tpu.core_type = #tpu.core_type<tc>, window_params = [{transform_indices = @transform_0, window_bounds = array<i64: 128, 32>}, {pipeline_mode = #tpu.pipeline_mode<synchronous>, transform_indices = @transform_1, window_bounds = array<i64: 32, 128>}, {pipeline_mode = #tpu.pipeline_mode<synchronous>, transform_indices = @transform_2, window_bounds = array<i64: 1, 128>}, {transform_indices = @transform_3, window_bounds = array<i64: 128, 128>}]} {
    %c0 = arith.constant 0 : index
    %c0_0 = arith.constant 0 : index
    %0 = vector.load %arg1[%c0, %c0_0] : memref<128x32xbf16, #tpu.memory_space<vmem>>, vector<128x32xbf16>
    %c0_1 = arith.constant 0 : index
    %c0_2 = arith.constant 0 : index
    %1 = vector.load %arg2[%c0_1, %c0_2] : memref<32x128xbf16, #tpu.memory_space<vmem>>, vector<32x128xbf16>
    %cst = arith.constant dense<0.000000e+00> : vector<128x128xf32>
    %2 = tpu.matmul %0, %1, %cst {dimension_numbers = #tpu.dot_dimension_numbers<[1], [0], [0], [1], [0, 0, 1, 1], [], []>} : vector<128x32xbf16>, vector<32x128xbf16>, vector<128x128xf32> -> vector<128x128xf32>
    %c0_3 = arith.constant 0 : index
    %c0_4 = arith.constant 0 : index
    %3 = vector.load %arg3[%c0_3, %c0_4] : memref<1x128xbf16, #tpu.memory_space<vmem>>, vector<1x128xbf16>
    %4 = arith.extf %3 : vector<1x128xbf16> to vector<1x128xf32>
    %5 = vector.broadcast %4 : vector<1x128xf32> to vector<128x128xf32>
    %6 = arith.addf %2, %5 : vector<128x128xf32>
    %7 = arith.truncf %6 : vector<128x128xf32> to vector<128x128xbf16>
    %c0_5 = arith.constant 0 : index
    %c0_6 = arith.constant 0 : index
    %8 = vector.load %arg4[%c0_5, %c0_6] : memref<128x128xbf16, #tpu.memory_space<vmem>>, vector<128x128xbf16>
    tpu.vector_store %arg4[%c0_5, %c0_6], %7 {strides = array<i32>} : memref<128x128xbf16, #tpu.memory_space<vmem>>, vector<128x128xbf16>,
    return
  }
  func.func @transform_0(%arg0: i32) -> (i32, i32) {
    %c0_i32 = arith.constant 0 : i32
    %c0_i32_0 = arith.constant 0 : i32
    return %arg0, %c0_i32 : i32, i32
  }
  func.func @transform_1(%arg0: i32) -> (i32, i32) {
    %c0_i32 = arith.constant 0 : i32
    %c0_i32_0 = arith.constant 0 : i32
    %c0_i32_1 = arith.constant 0 : i32
    return %c0_i32, %c0_i32_0 : i32, i32
  }
  func.func @transform_2(%arg0: i32) -> (i32, i32) {
    %c0_i32 = arith.constant 0 : i32
    %c0_i32_0 = arith.constant 0 : i32
    %c0_i32_1 = arith.constant 0 : i32
    return %c0_i32, %c0_i32_0 : i32, i32
  }
  func.func @transform_3(%arg0: i32) -> (i32, i32) {
    %c0_i32 = arith.constant 0 : i32
    %c0_i32_0 = arith.constant 0 : i32
    return %arg0, %c0_i32 : i32, i32
  }
}

</mosaic_0001>

<bundles_post_ra>
// kernel: tpu_custom_call.1
= control target key start
LH: loop header
LB: loop body
LE: loop exit
PB: predicated region body
PF: predicated region fallthrough
CT: control target
= control target key end

     0   :  { %8 = vsyncpa [#allocation3], 0  ;;  %s942_s0 = inlined_call_operand.vmem [shape: bf16[256,32], index: 0, kind: input, shape index: {}]   ;;  %s943_s1 = inlined_call_operand.vmem [shape: bf16[32,128], index: 1, kind: input, shape index: {}]   ;;  %s944_s2 = inlined_call_operand.vmem [shape: bf16[1,128], index: 2, kind: input, shape index: {}]   ;;  %s945_s3 = inlined_call_operand.hbm [shape: bf16[256,128], index: 3, kind: output, shape index: {}]  }
   0x1   :  { %10 = vsyncpa [#allocation3 + $0x1], 0  ;;  %s809_s12 = smov 0   ;;  %s811_s13 = smov 0  }
   0x2   :  { %s813_s14 = smov 0   ;;  %s815_s15 = smov 0  }
   0x3 LB: > { %s830_s16 = sadd.s32 4294967295, %s784_s15   ;;  %s529_s17 = sadd.s32 4294967294, %s784_s15   ;;  %s784_s15 = sphi %s815_s15, %s951_s15   ;;  %s780_s14 = sphi %s813_s14, %s950_s14   ;;  %s776_s13 = sphi %s811_s13, %s949_s13   ;;  %s772_s12 = sphi %s809_s12, %s948_s12  }
   0x4   : > { %s834_s18 = sadd.s32 1, %s784_s15   ;;  %s91_s19 = sadd.s32 1, %s780_s14 }
   0x5   : > { %s88_s20 = ssub.s32 %s784_s15, %s834_s18  ;;  %p101_p0 = scmp.ne.s32.totalorder %s780_s14, %s776_s13 }
   0x6   : > { %p89_p1 = scmp.eq.s32.totalorder %s88_s20, 0  ;;  %p102_p2 = scmp.eq.s32.totalorder %s830_s16, 1 }
   0x7   : > { %p107_p3 = scmp.ne.s32.totalorder %s776_s13, %s772_s12  ;;  %p108_p4 = scmp.eq.s32.totalorder %s529_s17, 1 }
   0x8   : > { %s845_s21 = scalar_select %p89_p1, %s780_s14, %s91_s19  }
   0x9   : > { %p847_p5 = por %p102_p2, %p101_p0  ;;  %p851_p6 = por %p108_p4, %p107_p3 }
   0xa   : > { %p532_p7 = scmp.ge.s32.totalorder %s784_s15, 1  ;;  %p141_p8 = scmp.lt.s32.totalorder %s784_s15, 3 }
   0xc   : > { %p142_p9 = pnand %p532_p7, %p141_p8 }
   0xd   : > { %s534_s26 = sshll.u32 (!%p142_p9), %s830_s16, 4  ;;  %s162_s8 = sand.u32 (!%p142_p9), 1, %s776_s13  }
   0xe   : > { %145 = sbr.rel (%p142_p9) target bundleno = 253 (0xfd), region = 32  ;;  %p166_p10 = scmp.lt.s32.totalorder (!%p142_p9), %s534_s26, 31 }
   0xf   : > { %s533_s9 = sshll.u32 (!%p142_p9), %s162_s8, 6  ;;  %s591_s11 = sshll.u32 (!%p142_p9), %s830_s16, 10 }
  0x10   : > { %s881_s10 = scalar_lea.vmem (!%p142_p9), [#allocation2], %s533_s9  ;;  %s893_s24 = scalar_lea.hbm (!%p142_p9), %s945_s3, %s591_s11 }
  0x11   : > { %s467_s17 = sshll.u32 (!%p142_p9), %s881_s10, 4  ;;  %s902_s16 = scalar_lea.sflag (!%p142_p9), [#allocation3], %s162_s8  ;;  %s895_s17 = int_to_ptr.vmem [resolvable:$true] %s467_s17 }
  0x12   : > { %s724_s25 = scalar_lea.vmem (!%p142_p9), %s895_s17, 1024 }
  0x13   : > { %v714_v0 = vld [vmem:[%s943_s1 + $0x8] sm:$0xff]   ;;  %v715_v1 = vld [vmem:[%s943_s1] sm:$0xff]   ;;  %s953_s26 = smov (!%p166_p10, %s534_s26), 31  ;;  %vm251_vm0 = vcmask 261120   ;;  %v195_v10 = vlaneseq  ;;  %p725_p11 = scmp.ne.s32.totalorder %s895_s17, %s724_s25 }
  0x14   : > { %649 = vmatprep.subr.bf16.mxu0 %v714_v0  ;;  %669 = vmatprep.subr.bf16.mxu1 %v714_v0  ;;  %s535_s29 = sshll.u32 %s953_s26, 2  ;;  %v193_v12 = vld [vmem:[%s944_s2] sm:$0x1]  ;;  %s786_s26 = smov [#allocation2]  }
  0x15   : > { %650 = vmatpush3.bf16.msra.mxu0 %v714_v0  ;;  %671 = vmatpush3.bf16.msra.mxu1 %v714_v0  ;;  %s169_s5 = scalar_lea.vmem %s942_s0, %s535_s29  ;;  %v196_v11 = vshrl.u32 %v195_v10, 7  ;;  %v194_v13 = vunpack.c.l.bf16 %v193_v12  ;;  %p726_p12 = pnand %p725_p11, %p847_p5 }
  0x16   : > { %651 = vmatprep.subr.bf16.mxu0 %v715_v1  ;;  %670 = vmatprep.subr.bf16.mxu1 %v715_v1  ;;  %v716_v2 = vld [vmem:[%s169_s5] sm:$0xff]   ;;  %v718_v4 = vld [vmem:[%s169_s5 + $0x8] sm:$0xff]   ;;  %v720_v6 = vld [vmem:[%s169_s5 + $0x10] sm:$0xff]   ;;  %s728_s27 = sshll.u32 %s786_s26, 4  ;;  %s729_s27 = int_to_ptr.vmem [resolvable:$false] %s728_s27 }
  0x17   : > { %v717_v3 = vld [vmem:[%s169_s5 + $0x20] sm:$0xff]   ;;  %653 = vmatprep.mubr.msk.bf16.mxu0 %vm251_vm0, %v716_v2  ;;  %v719_v5 = vld [vmem:[%s169_s5 + $0x28] sm:$0xff]   ;;  %v721_v7 = vld [vmem:[%s169_s5 + $0x30] sm:$0xff]   ;;  %v197_v14 = vsub.s32 0, %v196_v11  ;;  %p727_p13 = pneg %p726_p12  ;;  %s730_s28 = scalar_lea.vmem %s729_s27, 2048 }
  0x18   : > { %661 = vmatprep.mubr.msk.bf16.mxu1 %vm251_vm0, %v717_v3  ;;  %v722_v8 = vld [vmem:[%s169_s5 + $0x18] sm:$0xff]   ;;  %p731_p0 = scmp.lt.s32.totalorder %s895_s17, %s729_s27  ;;  %p732_p1 = scmp.lt.s32.totalorder %s730_s28, %s724_s25 }
  0x19   : > { %652 = vmatpush3.bf16.msra.mxu0 %v715_v1  ;;  %672 = vmatpush3.bf16.msra.mxu1 %v715_v1  ;;  %v723_v9 = vld [vmem:[%s169_s5 + $0x38] sm:$0xff]   ;;  %v198_v16 = vrot.slane %v194_v13, %v197_v14 }
  0x1a   : > { %p733_p2 = por %p732_p1, %p731_p0 }
  0x1c   : > { %654 = vmatmul.mubr.msk.bf16.vlgmr.msra.gmra.mxu0 %vm251_vm0, %v718_v4  ;;  %662 = vmatmul.mubr.msk.bf16.vlgmr.msra.gmra.mxu1 %vm251_vm0, %v719_v5  ;;  %p734_p3 = pnand %p733_p2, %p727_p13 }
  0x1d   : > { %657 = vmatprep.mubr.msk.bf16.mxu0 %vm251_vm0, %v720_v6  ;;  %665 = vmatprep.mubr.msk.bf16.mxu1 %vm251_vm0, %v721_v7 }
  0x24   : > { %658 = vmatmul.mubr.msk.bf16.gmra.mxu0 %vm251_vm0, %v722_v8  ;;  %666 = vmatmul.mubr.msk.bf16.gmra.mxu1 %vm251_vm0, %v723_v9 }
  0xdc   : > { %v655_v15 = vpop.f32.mrf.mxu0  ;;  %v663_v17 = vpop.f32.mrf.mxu1 }
  0xdd   : > { %v319_v21 = vadd.f32 %v655_v15, %v198_v16  ;;  %v351_v24 = vadd.f32 %v663_v17, %v198_v16 }
  0xde   : > { %v310_v18 = vpop.f32.mrf.mxu0  ;;  %v342_v19 = vpop.f32.mrf.mxu1 }
  0xdf   : > { %v311_v27 = vadd.f32 %v310_v18, %v198_v16  ;;  %v343_v31 = vadd.f32 %v342_v19, %v198_v16 }
  0xe0   : > { %v656_v20 = vpop.f32.mrf.mxu0  ;;  %v664_v23 = vpop.f32.mrf.mxu1 }
  0xe1   : > { %v322_v22 = vadd.f32 %v656_v20, %v198_v16  ;;  %v354_v25 = vadd.f32 %v664_v23, %v198_v16 }
  0xe2   : > { %v313_v26 = vpop.f32.mrf.mxu0  ;;  %v345_v30 = vpop.f32.mrf.mxu1 }
  0xe3   : > { %v600_v28 = vpack.c.bf16 %v322_v22, %v319_v21  ;;  %v314_v29 = vadd.f32 %v313_v26, %v198_v16  ;;  %v620_v32 = vpack.c.bf16 %v354_v25, %v351_v24  ;;  %v346_v33 = vadd.f32 %v345_v30, %v198_v16 }
  0xe4   : > { %v659_v34 = vpop.f32.mrf.mxu0  ;;  %v667_v36 = vpop.f32.mrf.mxu1 }
  0xe5   : > { %632 = vst [vmem:[%s881_s10 + $0x8] sm:$0xff] %v600_v28   ;;  %v595_v35 = vpack.c.bf16 %v314_v29, %v311_v27  ;;  %636 = vst [vmem:[%s881_s10 + $0x28] sm:$0xff] %v620_v32   ;;  %v615_v37 = vpack.c.bf16 %v346_v33, %v343_v31  ;;  %v335_v41 = vadd.f32 %v659_v34, %v198_v16 }
  0xe6   : > { %v326_v38 = vpop.f32.mrf.mxu0  ;;  %v358_v39 = vpop.f32.mrf.mxu1  ;;  %v367_v44 = vadd.f32 %v667_v36, %v198_v16 }
  0xe7   : > { %596 = vst [vmem:[%s881_s10] sm:$0xff] %v595_v35   ;;  %635 = vst [vmem:[%s881_s10 + $0x20] sm:$0xff] %v615_v37   ;;  %v327_v47 = vadd.f32 %v326_v38, %v198_v16  ;;  %v359_v51 = vadd.f32 %v358_v39, %v198_v16 }
  0xe8   : > { %v660_v40 = vpop.f32.mrf.mxu0  ;;  %v668_v43 = vpop.f32.mrf.mxu1 }
  0xe9   : > { %v338_v42 = vadd.f32 %v660_v40, %v198_v16  ;;  %v370_v45 = vadd.f32 %v668_v43, %v198_v16 }
  0xea   : > { %v329_v46 = vpop.f32.mrf.mxu0  ;;  %v361_v50 = vpop.f32.mrf.mxu1 }
  0xeb   : > { %v610_v48 = vpack.c.bf16 %v338_v42, %v335_v41  ;;  %v330_v49 = vadd.f32 %v329_v46, %v198_v16  ;;  %v630_v52 = vpack.c.bf16 %v370_v45, %v367_v44  ;;  %v362_v53 = vadd.f32 %v361_v50, %v198_v16 }
  0xed   : > { %634 = vst [vmem:[%s881_s10 + $0x18] sm:$0xff] %v610_v48   ;;  %v605_v54 = vpack.c.bf16 %v330_v49, %v327_v47  ;;  %638 = vst [vmem:[%s881_s10 + $0x38] sm:$0xff] %v630_v52   ;;  %v625_v55 = vpack.c.bf16 %v362_v53, %v359_v51 }
  0xef   : > { %633 = vst [vmem:[%s881_s10 + $0x10] sm:$0xff] %v605_v54   ;;  %637 = vst [vmem:[%s881_s10 + $0x30] sm:$0xff] %v625_v55  }
  0xf0   : > { %737 = shalt.err (!%p734_p3)
}
  0xf1   : > { %s738_s29 = scalar_lea.hbm %s893_s24, 1024  ;;  %s742_s5 = scalar_lea.hbm %s945_s3, 2048 }
  0xf2   : > { %p739_p4 = scmp.ne.s32.totalorder %s893_s24, %s738_s29  ;;  %p743_p9 = scmp.lt.s32.totalorder %s893_s24, %s945_s3 }
  0xf3   : > { %p744_p10 = scmp.lt.s32.totalorder %s742_s5, %s738_s29 }
  0xf4   : > { %p740_p7 = pnand %p739_p4, %p847_p5 }
  0xf5   : > { %p745_p11 = por %p744_p10, %p743_p9 }
  0xf6   : > { %p741_p8 = pneg %p740_p7 }
  0xf8   : > { %p746_p12 = pnand %p745_p11, %p741_p8 }
  0xfa   : > { %749 = shalt.err (!%p746_p12)
}
  0xfb   : > { %s787_s8 = smov 64   ;;  %s788_s9 = smov 4  }
  0xfc   : > { %673 = dma.vmem_to_hbm [thread:$0]  (%p847_p5), %s895_s17, 1024, %s893_s24, %s902_s16, %s787_s8, %s787_s8, %s788_s9  }
  0xfd PF: > { %p679_p13 = scmp.ge.s32.totalorder %s784_s15, 2  ;;  %s482_s10 = sand.u32 1, %s772_s12  }
  0xfe   : > { %s483_s11 = scalar_lea.sflag [#allocation3], %s482_s10 }
  0xff   : > { %p676_p0 = pnand %p679_p13, %p851_p6 }
 0x101   : > { %p677_p1 = pneg %p676_p0 }
 0x103   : > { %767 = dma.done.wait (%p677_p1), %s483_s11, 1024  }
 0x104   : > { %769 = vsyncadd (%p677_p1), %s483_s11, 4294966272  ;;  %p13_p2 = scmp.ge.s32.totalorder %s834_s18, 4   ;;  %s948_s12 = smov %s776_s13 }
 0x105   : > { %s949_s13 = smov %s780_s14  ;;  %s950_s14 = smov %s845_s21 }
 0x106   : > { %s951_s15 = smov %s834_s18  ;;  %15 = sbr.rel (!%p13_p2) target bundleno = 3 (0x3), region = 67 }
 0x10b   :  { %488 = vsyncpa [#allocation3], 1 }
 0x10c   :  { %490 = vsyncpa [#allocation3 + $0x1], 1 }

</bundles_post_ra>
